<compile_context>
chip_gen: v7x
topology: tpu7x:2x2x1
jax: 0.10.0
libtpu: 0.0.40
codegen_flags: <defaults>
</compile_context>

<pallas_src>
import functools
import math

import jax
import jax.numpy as jnp
import numpy as np
from jax.experimental import pallas as pl
from jax.experimental.pallas import tpu as pltpu

_BN_EPS = 1e-5
_HIGHEST = jax.lax.Precision.HIGHEST


# ---------------------------------------------------------------------------
# Small static helpers
# ---------------------------------------------------------------------------
def _pad128(s):
    return ((s + 127) // 128) * 128


def _pad8(c):
    return ((c + 7) // 8) * 8


@functools.lru_cache(maxsize=None)
def _roll_matches_jnp():
    """Probe the hardware rotate direction once so conv tap shifts are robust
    to either pltpu.roll sign convention."""
    def k(x_ref, o_ref):
        o_ref[...] = pltpu.roll(x_ref[...], 1, 1)

    x = jnp.arange(128, dtype=jnp.float32).reshape(1, 128)
    y = pl.pallas_call(k, out_shape=jax.ShapeDtypeStruct((1, 128), jnp.float32))(x)
    return bool(y[0, 1] == 0.0)          # jnp.roll semantics: y[1] == x[0]


def _roll_amount(delta, size):
    """pltpu.roll amount so that rolled[..., j] == x[..., (j + delta) % size]."""
    delta = int(delta) % size
    if delta == 0:
        return 0
    return int((-delta) % size) if _roll_matches_jnp() else delta


def _conv_roll_amounts(w, s_pad):
    return tuple(_roll_amount((kh - 1) * w + (kw - 1), s_pad)
                 for kh in range(3) for kw in range(3))


def _conv_masks_np(h, w, s_pad):
    """(9, s_pad) 0/1 masks: mask[t, j] == 1 iff flattened output position j has
    an in-image source for tap t of a 3x3 / pad=1 convolution."""
    m = np.zeros((9, s_pad), np.float32)
    ys, xs = np.divmod(np.arange(h * w), w)
    for kh in range(3):
        for kw in range(3):
            dy, dx = kh - 1, kw - 1
            ok = ((ys + dy >= 0) & (ys + dy < h) &
                  (xs + dx >= 0) & (xs + dx < w))
            m[kh * 3 + kw, :h * w] = ok.astype(np.float32)
    return m


def _pool_select_np(h_in, w_in, s_in_pad, s_out_pad):
    """(s_in_pad, s_out_pad) 0/1 selection matrix compacting 2x2-max results
    (held at even rows/cols of the pre-pool grid) into the pooled grid."""
    h_out, w_out = h_in // 2, w_in // 2
    sel = np.zeros((s_in_pad, s_out_pad), np.float32)
    for y in range(h_out):
        for x in range(w_out):
            sel[2 * y * w_in + 2 * x, y * w_out + x] = 1.0
    return sel


def _upsample_scatter_np(h_in, w_in, s_in_pad, h_out, w_out, s_out_pad):
    """Per-tap scatter matrices for ConvTranspose2d(k=2, s=2) placed (with the
    centred F.pad offset) into an (h_out, w_out) frame, plus the bias coverage
    mask."""
    dh, dw = h_out - 2 * h_in, w_out - 2 * w_in
    pt, pleft = dh // 2, dw // 2
    scat = np.zeros((4, s_in_pad, s_out_pad), np.float32)
    cov = np.zeros((1, s_out_pad), np.float32)
    for ky in range(2):
        for kx in range(2):
            t = ky * 2 + kx
            for y in range(h_in):
                py = 2 * y + ky + pt
                if not 0 <= py < h_out:
                    continue
                for x in range(w_in):
                    px = 2 * x + kx + pleft
                    if not 0 <= px < w_out:
                        continue
                    scat[t, y * w_in + x, py * w_out + px] = 1.0
                    cov[0, py * w_out + px] = 1.0
    return scat, cov


# ---------------------------------------------------------------------------
# In-kernel building blocks (traced inside Pallas kernels)
# ---------------------------------------------------------------------------
def _shift_lanes(x, amount):
    if amount == 0:
        return x
    return pltpu.roll(x, amount, 1)


def _conv3x3_bn_relu(x, w_mat, scale, shift, masks, rolls):
    """x: (Cin, S) f32; w_mat: (Cout, 9*Cin) bf16 -> (Cout, S) f32.
    Single im2col MXU matmul; BN + conv bias folded into scale/shift."""
    taps = []
    for t in range(9):
        taps.append(_shift_lanes(x, rolls[t]) * masks[t:t + 1, :])
    patches = jnp.concatenate(taps, axis=0).astype(jnp.bfloat16)   # (9*Cin, S)
    y = jnp.dot(w_mat, patches, preferred_element_type=jnp.float32)
    return jnp.maximum(y * scale + shift, 0.0)


def _maxpool2x2(x, sel, pool_rolls):
    """2x2/stride-2 max pool of a lane-flattened (C, S_in) map, compacted with
    an exact 0/1 selection matmul to (C, S_out)."""
    m = jnp.maximum(x, _shift_lanes(x, pool_rolls[0]))     # + (0, 1) neighbour
    m = jnp.maximum(m, _shift_lanes(m, pool_rolls[1]))     # + (1, 0) neighbour
    return jnp.dot(m, sel, preferred_element_type=jnp.float32,
                   precision=_HIGHEST)


def _conv_transpose_2x2(x, wt_ref, bt_ref, scat_ref, cov_ref):
    """ConvTranspose2d(k=2, s=2): 4 per-tap matmuls, exact scatter matmuls do
    the de-interleave + centre-pad into the skip frame."""
    xb = x.astype(jnp.bfloat16)
    out = None
    for t in range(4):
        v = jnp.dot(wt_ref[t], xb, preferred_element_type=jnp.float32)
        o = jnp.dot(v, scat_ref[t], preferred_element_type=jnp.float32,
                    precision=_HIGHEST)
        out = o if out is None else out + o
    return out + bt_ref[...] * cov_ref[...]


# ---------------------------------------------------------------------------
# Pallas kernels (one fused kernel per UNet level)
# ---------------------------------------------------------------------------
def _make_encoder_kernel(conv_rolls, pool_rolls):
    do_pool = pool_rolls is not None

    def kernel(*refs):
        if do_pool:
            (x_ref, sel_ref, masks_ref, w1_ref, s1_ref, h1_ref,
             w2_ref, s2_ref, h2_ref, o_ref) = refs
        else:
            (x_ref, masks_ref, w1_ref, s1_ref, h1_ref,
             w2_ref, s2_ref, h2_ref, o_ref) = refs
        x = x_ref[0]
        if do_pool:
            x = _maxpool2x2(x, sel_ref[...], pool_rolls)
        masks = masks_ref[...]
        y = _conv3x3_bn_relu(x, w1_ref[...], s1_ref[...], h1_ref[...],
                             masks, conv_rolls)
        y = _conv3x3_bn_relu(y, w2_ref[...], s2_ref[...], h2_ref[...],
                             masks, conv_rolls)
        o_ref[0] = y

    return kernel


def _make_decoder_kernel(conv_rolls, has_final):
    def kernel(*refs):
        (x_ref, skip_ref, scat_ref, cov_ref, wt_ref, bt_ref, masks_ref,
         w1_ref, s1_ref, h1_ref, w2_ref, s2_ref, h2_ref) = refs[:13]
        o_ref = refs[-1]
        up = _conv_transpose_2x2(x_ref[0], wt_ref, bt_ref, scat_ref, cov_ref)
        y = jnp.concatenate([skip_ref[0], up], axis=0)    # cat([x2, x1], dim=1)
        masks = masks_ref[...]
        y = _conv3x3_bn_relu(y, w1_ref[...], s1_ref[...], h1_ref[...],
                             masks, conv_rolls)
        y = _conv3x3_bn_relu(y, w2_ref[...], s2_ref[...], h2_ref[...],
                             masks, conv_rolls)
        if has_final:                                     # fused 1x1 output conv
            wf_ref, bf_ref = refs[13], refs[14]
            y = jnp.dot(wf_ref[...], y.astype(jnp.bfloat16),
                        preferred_element_type=jnp.float32) + bf_ref[...]
        o_ref[0] = y

    return kernel


def _pointwise_kernel(x_ref, w_ref, b_ref, o_ref):
    o_ref[0] = jnp.dot(w_ref[...], x_ref[0].astype(jnp.bfloat16),
                       preferred_element_type=jnp.float32) + b_ref[...]


# ---------------------------------------------------------------------------
# pallas_call wrappers
# ---------------------------------------------------------------------------
def _batch_block(shape):
    nd = len(shape)

    def imap(i):
        return (i,) + (0,) * (nd - 1)

    return pl.BlockSpec((1,) + tuple(shape[1:]), imap)


def _full_block(shape):
    nd = len(shape)

    def imap(i):
        return (0,) * nd

    return pl.BlockSpec(tuple(shape), imap)


def _cparams():
    # Batch axis "parallel" (v7x dual TensorCore); explicit VMEM budget
    # (v5e default scoped VMEM is only 16 MiB, physical >= 64 MiB everywhere).
    return pltpu.CompilerParams(dimension_semantics=("parallel",),
                                vmem_limit_bytes=32 * 1024 * 1024)


def _fold_conv_bn(w, b, g, be, m, v, cin_pad=None):
    """Fold Conv2d bias + inference BatchNorm into per-channel scale/shift and
    reshape the OIHW weight to a tap-major (Cout, 9*cin_pad) bf16 matrix."""
    cout, cin = w.shape[0], w.shape[1]
    if cin_pad is None:
        cin_pad = cin
    wt = jnp.transpose(w, (0, 2, 3, 1))                   # (Cout, kh, kw, Cin)
    if cin_pad != cin:
        wt = jnp.pad(wt, ((0, 0), (0, 0), (0, 0), (0, cin_pad - cin)))
    w_mat = wt.reshape(cout, 9 * cin_pad).astype(jnp.bfloat16)
    scale = g / jnp.sqrt(v + _BN_EPS)
    shift = be + (b - m) * scale
    return w_mat, scale.reshape(cout, 1), shift.reshape(cout, 1)


def _encoder_level(x_flat, p, h_in, w_in, pool):
    """One fused encoder level ([maxpool] + DoubleConv) as a single pallas_call.
    x_flat: (N, C, S_in_pad) lane-flattened activation."""
    n, c_in, s_in_pad = x_flat.shape
    h, w = (h_in // 2, w_in // 2) if pool else (h_in, w_in)
    s_pad = _pad128(h * w)

    w1, sc1, sh1 = _fold_conv_bn(p['w1'], p['b1'], p['g1'], p['be1'],
                                 p['m1'], p['v1'], cin_pad=c_in)
    w2, sc2, sh2 = _fold_conv_bn(p['w2'], p['b2'], p['g2'], p['be2'],
                                 p['m2'], p['v2'])
    c_out = w2.shape[0]

    conv_rolls = _conv_roll_amounts(w, s_pad)
    masks = jnp.asarray(_conv_masks_np(h, w, s_pad))

    args = [x_flat]
    pool_rolls = None
    if pool:
        pool_rolls = (_roll_amount(1, s_in_pad), _roll_amount(w_in, s_in_pad))
        args.append(jnp.asarray(_pool_select_np(h_in, w_in, s_in_pad, s_pad)))
    args += [masks, w1, sc1, sh1, w2, sc2, sh2]

    in_specs = [_batch_block(x_flat.shape)] + [_full_block(a.shape)
                                               for a in args[1:]]
    out = pl.pallas_call(
        _make_encoder_kernel(conv_rolls, pool_rolls),
        out_shape=jax.ShapeDtypeStruct((n, c_out, s_pad), jnp.float32),
        grid=(n,),
        in_specs=in_specs,
        out_specs=_batch_block((n, c_out, s_pad)),
        compiler_params=_cparams(),
    )(*args)
    return out, h, w


def _decoder_level(x_flat, skip_flat, p, h_in, w_in, h_skip, w_skip,
                   final_w=None, final_b=None):
    """One fused decoder level (ConvTranspose(2,2) + centre pad + skip concat +
    DoubleConv [+ final 1x1 conv]) as a single pallas_call."""
    n, c_in, s_in_pad = x_flat.shape
    _, c_skip, s_out_pad = skip_flat.shape

    wt = jnp.transpose(p['tw'], (2, 3, 1, 0))             # (kh, kw, Cout, Cin)
    c_up = wt.shape[2]
    wt = wt.reshape(4, c_up, c_in).astype(jnp.bfloat16)
    bt = p['tb'].reshape(c_up, 1).astype(jnp.float32)
    scat_np, cov_np = _upsample_scatter_np(h_in, w_in, s_in_pad,
                                           h_skip, w_skip, s_out_pad)
    scat, cov = jnp.asarray(scat_np), jnp.asarray(cov_np)

    dc = p['dc']
    w1, sc1, sh1 = _fold_conv_bn(dc['w1'], dc['b1'], dc['g1'], dc['be1'],
                                 dc['m1'], dc['v1'], cin_pad=c_skip + c_up)
    w2, sc2, sh2 = _fold_conv_bn(dc['w2'], dc['b2'], dc['g2'], dc['be2'],
                                 dc['m2'], dc['v2'])
    c_out = w2.shape[0]

    conv_rolls = _conv_roll_amounts(w_skip, s_out_pad)
    masks = jnp.asarray(_conv_masks_np(h_skip, w_skip, s_out_pad))

    args = [x_flat, skip_flat, scat, cov, wt, bt, masks,
            w1, sc1, sh1, w2, sc2, sh2]
    has_final = final_w is not None
    if has_final:
        nc = final_w.shape[0]
        args.append(final_w.reshape(nc, c_out).astype(jnp.bfloat16))
        args.append(final_b.reshape(nc, 1).astype(jnp.float32))
        c_res = nc
    else:
        c_res = c_out

    in_specs = ([_batch_block(x_flat.shape), _batch_block(skip_flat.shape)] +
                [_full_block(a.shape) for a in args[2:]])
    out = pl.pallas_call(
        _make_decoder_kernel(conv_rolls, has_final),
        out_shape=jax.ShapeDtypeStruct((n, c_res, s_out_pad), jnp.float32),
        grid=(n,),
        in_specs=in_specs,
        out_specs=_batch_block((n, c_res, s_out_pad)),
        compiler_params=_cparams(),
    )(*args)
    return out


def _pointwise_conv(x_flat, w, b):
    """1x1 conv on a lane-flattened activation (only used when num_layers == 1,
    otherwise the final conv is fused into the last decoder kernel)."""
    n, c, s_pad = x_flat.shape
    nc = w.shape[0]
    wf = w.reshape(nc, c).astype(jnp.bfloat16)
    bf = b.reshape(nc, 1).astype(jnp.float32)
    return pl.pallas_call(
        _pointwise_kernel,
        out_shape=jax.ShapeDtypeStruct((n, nc, s_pad), jnp.float32),
        grid=(n,),
        in_specs=[_batch_block(x_flat.shape), _full_block(wf.shape),
                  _full_block(bf.shape)],
        out_specs=_batch_block((n, nc, s_pad)),
        compiler_params=_cparams(),
    )(x_flat, wf, bf)


# ---------------------------------------------------------------------------
# UNet forward (Pallas path)
# ---------------------------------------------------------------------------
def unet_forward(x_nchw, params, num_layers):
    """Pallas UNet_model forward: (N, Cin, H, W) -> (N, num_classes, H, W)."""
    n, c, h, w = x_nchw.shape
    s_pad = _pad128(h * w)
    c_pad = _pad8(c)
    x = x_nchw.reshape(n, c, h * w)
    x = jnp.pad(x, ((0, 0), (0, c_pad - c), (0, s_pad - h * w)))

    act, hh, ww = _encoder_level(x, params['enc'][0], h, w, pool=False)
    feats = [(act, hh, ww)]
    for i in range(1, num_layers):
        act, hh, ww = _encoder_level(act, params['enc'][i], hh, ww, pool=True)
        feats.append((act, hh, ww))

    out, oh, ow = feats[-1]
    if not params['dec']:
        out = _pointwise_conv(out, params['final_w'], params['final_b'])
    for i, up in enumerate(params['dec']):
        skip, sh_, sw_ = feats[-2 - i]
        last = (i == len(params['dec']) - 1)
        out = _decoder_level(out, skip, up, oh, ow, sh_, sw_,
                             final_w=params['final_w'] if last else None,
                             final_b=params['final_b'] if last else None)
        oh, ow = sh_, sw_

    nc = params['final_w'].shape[0]
    return out[:, :, :h * w].reshape(n, nc, h, w)


# ---------------------------------------------------------------------------
# Pure-JAX reference (mirrors the PyTorch module, NCHW, bf16 MXU inputs)
# ---------------------------------------------------------------------------
def _ref_conv_bn_relu(x, w, b, g, be, m, v):
    y = jax.lax.conv_general_dilated(
        x.astype(jnp.bfloat16), w.astype(jnp.bfloat16),
        window_strides=(1, 1), padding=((1, 1), (1, 1)),
        dimension_numbers=("NCHW", "OIHW", "NCHW"),
        preferred_element_type=jnp.float32)
    y = y + b[None, :, None, None]
    y = (y - m[None, :, None, None]) / jnp.sqrt(v[None, :, None, None] + _BN_EPS)
    y = y * g[None, :, None, None] + be[None, :, None, None]
    return jax.nn.relu(y)


def _ref_double_conv(x, p):
    x = _ref_conv_bn_relu(x, p['w1'], p['b1'], p['g1'], p['be1'], p['m1'], p['v1'])
    return _ref_conv_bn_relu(x, p['w2'], p['b2'], p['g2'], p['be2'], p['m2'], p['v2'])


def _ref_maxpool(x):
    n, c, h, w = x.shape
    return jnp.max(x.reshape(n, c, h // 2, 2, w // 2, 2), axis=(3, 5))


def _ref_conv_transpose(x, wt, bt):
    y = jnp.einsum('nihw,iokl->nohkwl', x.astype(jnp.bfloat16),
                   wt.astype(jnp.bfloat16), preferred_element_type=jnp.float32)
    n, co, h, _, w, _ = y.shape
    return y.reshape(n, co, 2 * h, 2 * w) + bt[None, :, None, None]


def unet_forward_reference(x, params, num_layers):
    xi = [_ref_double_conv(x, params['enc'][0])]
    for i in range(1, num_layers):
        xi.append(_ref_double_conv(_ref_maxpool(xi[-1]), params['enc'][i]))
    out = xi[-1]
    for i, up in enumerate(params['dec']):
        u = _ref_conv_transpose(out, up['tw'], up['tb'])
        skip = xi[-2 - i]
        dh = skip.shape[2] - u.shape[2]
        dw = skip.shape[3] - u.shape[3]
        u = jnp.pad(u, ((0, 0), (0, 0), (dh // 2, dh - dh // 2),
                        (dw // 2, dw - dw // 2)))
        out = _ref_double_conv(jnp.concatenate([skip, u], axis=1), up['dc'])
    out = jax.lax.conv_general_dilated(
        out.astype(jnp.bfloat16), params['final_w'].astype(jnp.bfloat16),
        (1, 1), ((0, 0), (0, 0)), dimension_numbers=("NCHW", "OIHW", "NCHW"),
        preferred_element_type=jnp.float32)
    return out + params['final_b'][None, :, None, None]


# ---------------------------------------------------------------------------
# Parameter construction (PyTorch-shaped tensors)
# ---------------------------------------------------------------------------
def _init_conv(key, cin, cout, k):
    kw, kb = jax.random.split(key)
    bound = 1.0 / math.sqrt(cin * k * k)
    w = jax.random.uniform(kw, (cout, cin, k, k), jnp.float32, -bound, bound)
    b = jax.random.uniform(kb, (cout,), jnp.float32, -bound, bound)
    return w, b


def _init_bn(key, c):
    kg, kb, km, kv = jax.random.split(key, 4)
    gamma = 1.0 + 0.1 * jax.random.normal(kg, (c,), jnp.float32)
    beta = 0.1 * jax.random.normal(kb, (c,), jnp.float32)
    mean = 0.1 * jax.random.normal(km, (c,), jnp.float32)
    var = 0.5 + jnp.abs(jax.random.normal(kv, (c,), jnp.float32))
    return gamma, beta, mean, var


def _init_double_conv(key, cin, cout):
    k1, k2, k3, k4 = jax.random.split(key, 4)
    w1, b1 = _init_conv(k1, cin, cout, 3)
    g1, be1, m1, v1 = _init_bn(k2, cout)
    w2, b2 = _init_conv(k3, cout, cout, 3)
    g2, be2, m2, v2 = _init_bn(k4, cout)
    return dict(w1=w1, b1=b1, g1=g1, be1=be1, m1=m1, v1=v1,
                w2=w2, b2=b2, g2=g2, be2=be2, m2=m2, v2=v2)


def init_unet_params(key, num_classes, input_channels, num_layers, features_start):
    keys = jax.random.split(key, 2 * num_layers)
    enc = [_init_double_conv(keys[0], input_channels, features_start)]
    feats = features_start
    for i in range(1, num_layers):
        enc.append(_init_double_conv(keys[i], feats, feats * 2))
        feats *= 2
    dec = []
    for i in range(num_layers - 1):
        kt, kb, kd = jax.random.split(keys[num_layers + i], 3)
        bound = 1.0 / math.sqrt(feats * 4)
        tw = jax.random.uniform(kt, (feats, feats // 2, 2, 2), jnp.float32,
                                -bound, bound)
        tb = jax.random.uniform(kb, (feats // 2,), jnp.float32, -bound, bound)
        dec.append(dict(tw=tw, tb=tb, dc=_init_double_conv(kd, feats, feats // 2)))
        feats //= 2
    wf, bf = _init_conv(keys[2 * num_layers - 1], feats, num_classes, 1)
    return dict(enc=enc, dec=dec, final_w=wf, final_b=bf)


# ---------------------------------------------------------------------------
if __name__ == "__main__":
    key = jax.random.PRNGKey(0)
    kx, kp = jax.random.split(key)

    # Small UNet_model(num_classes=4, input_channels=3, num_layers=3,
    # features_start=8, bilinear=False) on a (2, 3, 32, 32) input.
    N, CIN, H, W = 2, 3, 32, 32
    NUM_CLASSES, NUM_LAYERS, FEATURES_START = 4, 3, 8

    x = jax.random.normal(kx, (N, CIN, H, W), dtype=jnp.float32)
    params = init_unet_params(kp, NUM_CLASSES, CIN, NUM_LAYERS, FEATURES_START)

    _roll_matches_jnp()   # pin the rotate direction before tracing

    fwd = jax.jit(functools.partial(unet_forward, num_layers=NUM_LAYERS))
    out = jax.block_until_ready(fwd(x, params))

    ref = unet_forward_reference(x, params, NUM_LAYERS)
    assert out.shape == (N, NUM_CLASSES, H, W), out.shape
    err = float(jnp.max(jnp.abs(out - ref)))
    assert jnp.allclose(out, ref, atol=2e-2, rtol=2e-2), f"max abs err = {err}"

    print("KERNEL_OK")
</pallas_src>

<mosaic_0001>
module attributes {stable_mosaic.version = 11 : i64} {
  func.func @k(%arg0: memref<1x128xf32, #tpu.memory_space<vmem>>, %arg1: memref<1x128xf32, #tpu.memory_space<vmem>>) attributes {dimension_semantics = [], scalar_prefetch = 0 : i64, scratch_operands = 0 : i64, tpu.core_type = #tpu.core_type<tc>} {
    %c0 = arith.constant 0 : index
    %c0_0 = arith.constant 0 : index
    %0 = vector.load %arg0[%c0, %c0_0] : memref<1x128xf32, #tpu.memory_space<vmem>>, vector<1x128xf32>
    %c1_i32 = arith.constant 1 : i32
    %1 = tpu.dynamic_rotate %0 by %c1_i32 dim 1 : vector<1x128xf32>, i32 -> vector<1x128xf32>
    %c0_1 = arith.constant 0 : index
    %c0_2 = arith.constant 0 : index
    %2 = vector.load %arg1[%c0_1, %c0_2] : memref<1x128xf32, #tpu.memory_space<vmem>>, vector<1x128xf32>
    tpu.vector_store %arg1[%c0_1, %c0_2], %1 {strides = array<i32>} : memref<1x128xf32, #tpu.memory_space<vmem>>, vector<1x128xf32>,
    return
  }
}

</mosaic_0001>

<bundles_post_ra>
// kernel: tpu_custom_call.1
= control target key start
LH: loop header
LB: loop body
LE: loop exit
PB: predicated region body
PF: predicated region fallthrough
CT: control target
= control target key end

     0   :  { %6 = vsyncpa [#allocation3], 0  ;;  %s128_s0 = inlined_call_operand.hbm [shape: f32[1,128], index: 0, kind: input, shape index: {}]   ;;  %s129_s1 = inlined_call_operand.hbm [shape: f32[1,128], index: 1, kind: output, shape index: {}]  }
   0x1   :  { %7 = vsyncpa [#allocation4], 0  ;;  %s91_s6 = smov [#allocation2]   ;;  %s43_s10 = scalar_lea.hbm %s128_s0, 16 }
   0x2   :  { %s14_s7 = sshll.u32 %s91_s6, 4  ;;  %p44_p0 = scmp.ne.s32.totalorder %s128_s0, %s43_s10  ;;  %s15_s7 = int_to_ptr.vmem [resolvable:$true] %s14_s7 }
   0x3   :  { %p47_p1 = scmp.lt.u32.totalorder %s43_s10, %s128_s0 }
   0x5   :  { %p49_p2 = pnand %p47_p1, %p44_p0 }
   0x7   :  { %52 = shalt.err (!%p49_p2)
}
   0x8   :  { %s53_s15 = scalar_lea.vmem %s15_s7, 16  ;;  %s57_s16 = scalar_lea.vmem %s15_s7, 32 }
   0x9   :  { %p54_p3 = scmp.ne.s32.totalorder %s15_s7, %s53_s15  ;;  %p58_p4 = scmp.lt.s32.totalorder %s15_s7, %s15_s7 }
   0xa   :  { %p59_p5 = scmp.lt.s32.totalorder %s57_s16, %s53_s15 }
   0xc   :  { %p60_p6 = por %p59_p5, %p58_p4 }
   0xe   :  { %p61_p7 = pnand %p60_p6, %p54_p3 }
  0x10   :  { %64 = shalt.err (!%p61_p7)
}
  0x11   :  { %17 = dma.hbm_to_vmem [thread:$0]  %s128_s0, 16, %s15_s7, [#allocation3]  }
  0x12   :  { %87 = dma.done.wait [#allocation3], 16  }
  0x13   :  { %88 = vsyncadd [#allocation3], 4294967280  ;;  %v21_v0 = vld [vmem:[#allocation2] sm:$0x1]  ;;  %s92_s19 = smov 1   ;;  %s93_s20 = smov [#allocation5]  }
  0x14   :  { %22 = vrot.lane.b32.xlu0 %v21_v0, %s92_s19  ;;  %s31_s21 = sshll.u32 %s93_s20, 4  ;;  %s32_s21 = int_to_ptr.vmem [resolvable:$true] %s31_s21 }
  0x15   :  { %s65_s22 = scalar_lea.vmem %s32_s21, 16  ;;  %s69_s23 = scalar_lea.vmem %s32_s21, 32 }
  0x16   :  { %p66_p8 = scmp.ne.s32.totalorder %s32_s21, %s65_s22  ;;  %p70_p9 = scmp.lt.s32.totalorder %s32_s21, %s32_s21 }
  0x17   :  { %p71_p10 = scmp.lt.s32.totalorder %s69_s23, %s65_s22 }
  0x19   :  { %p72_p11 = por %p71_p10, %p70_p9 }
  0x1b   :  { %p73_p12 = pnand %p72_p11, %p66_p8 }
  0x86   :  { %v23_v1 = vpop.permute.xlu0 %22 }
  0x87   :  { %24 = vst [vmem:[#allocation5] sm:$0x1] %v23_v1 }
  0x88   :  { %76 = shalt.err (!%p73_p12)
}
  0x89   :  { %s77_s25 = scalar_lea.hbm %s129_s1, 16 }
  0x8a   :  { %p78_p13 = scmp.ne.s32.totalorder %s129_s1, %s77_s25  ;;  %p81_p0 = scmp.lt.u32.totalorder %s77_s25, %s129_s1 }
  0x8c   :  { %p83_p1 = pnand %p81_p0, %p78_p13 }
  0x8e   :  { %86 = shalt.err (!%p83_p1)
}
  0x8f   :  { %34 = dma.vmem_to_hbm [thread:$0]  %s32_s21, 16, %s129_s1, [#allocation4]  }
  0x90   :  { %89 = dma.done.wait [#allocation4], 16  }
  0x91   :  { %90 = vsyncadd [#allocation4], 4294967280 }
  0x92   :  { %38 = vsyncpa [#allocation3], 1 }
  0x93   :  { %39 = vsyncpa [#allocation4], 1 }

</bundles_post_ra>
